<compile_context>
chip_gen: v7x
topology: tpu7x:2x2x1
jax: 0.10.0
libtpu: 0.0.40
codegen_flags: <defaults>
</compile_context>

<pallas_src>
import functools

import jax
import jax.numpy as jnp
from jax.experimental import pallas as pl
from jax.experimental.pallas import tpu as pltpu


def mlp_kernel(x_ref, w1_ref, b1_ref, w2_ref, b2_ref, w3_ref, b3_ref,
               o_ref, h1_acc):
    k = pl.program_id(1)

    @pl.when(k == 0)
    def _():
        h1_acc[...] = jnp.zeros_like(h1_acc)

    # fc1 partial product for this K tile (bf16 operands, f32 accumulation).
    h1_acc[...] += jnp.dot(x_ref[...], w1_ref[...],
                           preferred_element_type=jnp.float32)

    @pl.when(k == pl.num_programs(1) - 1)
    def _():
        # Bias + ReLU in f32 (VPU); matmul inputs cast back to bf16 for the MXU.
        h1 = jnp.maximum(h1_acc[...] + b1_ref[...], 0.0)
        h2 = jnp.dot(h1.astype(w2_ref.dtype), w2_ref[...],
                     preferred_element_type=jnp.float32)
        h2 = jnp.maximum(h2 + b2_ref[...], 0.0)
        out = jnp.dot(h2.astype(w3_ref.dtype), w3_ref[...],
                      preferred_element_type=jnp.float32)
        o_ref[...] = (out + b3_ref[...]).astype(o_ref.dtype)


def _round_up(x, m):
    return ((x + m - 1) // m) * m


@functools.partial(jax.jit, static_argnums=(7, 8))
def _mlp_forward_impl(x, w1, b1, w2, b2, w3, b3, tb, tk):
    B, in_f = x.shape
    h2_f = w1.shape[0]          # 2 * hidden
    h_f = w2.shape[0]           # hidden
    nc = w3.shape[0]            # num_classes
    out_dtype = x.dtype
    mxu_dtype = jnp.bfloat16

    # Tile counts / padded extents (no silently-dropped batch remainder).
    n_bt = pl.cdiv(B, tb)
    b_pad = n_bt * tb
    n_kt = pl.cdiv(in_f, tk)
    in_pad = n_kt * tk
    # Lane-dense intermediates / logits (multiples of 128).
    h2_pad = _round_up(h2_f, 128)
    h_pad = _round_up(h_f, 128)
    nc_pad = _round_up(nc, 128)

    # Glue (fused by jit): transpose to (in, out), cast to bf16, zero-pad,
    # biases as (1, out) f32 rows.  Zero padding keeps the math exact.
    xp = jnp.zeros((b_pad, in_pad), mxu_dtype).at[:B, :in_f].set(
        x.astype(mxu_dtype))
    w1t = jnp.zeros((in_pad, h2_pad), mxu_dtype).at[:in_f, :h2_f].set(
        w1.T.astype(mxu_dtype))
    w2t = jnp.zeros((h2_pad, h_pad), mxu_dtype).at[:h2_f, :h_f].set(
        w2.T.astype(mxu_dtype))
    w3t = jnp.zeros((h_pad, nc_pad), mxu_dtype).at[:h_f, :nc].set(
        w3.T.astype(mxu_dtype))
    b1r = jnp.zeros((1, h2_pad), jnp.float32).at[0, :h2_f].set(
        b1.astype(jnp.float32))
    b2r = jnp.zeros((1, h_pad), jnp.float32).at[0, :h_f].set(
        b2.astype(jnp.float32))
    b3r = jnp.zeros((1, nc_pad), jnp.float32).at[0, :nc].set(
        b3.astype(jnp.float32))

    const = lambda shape: pl.BlockSpec(shape, lambda i, k: (0, 0))

    out_pad = pl.pallas_call(
        mlp_kernel,
        out_shape=jax.ShapeDtypeStruct((b_pad, nc_pad), out_dtype),
        grid_spec=pltpu.PrefetchScalarGridSpec(
            num_scalar_prefetch=0,
            grid=(n_bt, n_kt),
            in_specs=[
                pl.BlockSpec((tb, tk), lambda i, k: (i, k)),      # x tile
                pl.BlockSpec((tk, h2_pad), lambda i, k: (k, 0)),  # W1^T K-tile
                const((1, h2_pad)),                               # b1
                const((h2_pad, h_pad)),                           # W2^T (resident)
                const((1, h_pad)),                                # b2
                const((h_pad, nc_pad)),                           # W3^T (resident)
                const((1, nc_pad)),                               # b3
            ],
            out_specs=pl.BlockSpec((tb, nc_pad), lambda i, k: (i, 0)),
            scratch_shapes=[pltpu.VMEM((tb, h2_pad), jnp.float32)],  # fc1 acc
        ),
        compiler_params=pltpu.CompilerParams(
            dimension_semantics=("parallel", "arbitrary"),
            vmem_limit_bytes=48 * 1024 * 1024,
        ),
    )(xp, w1t, b1r, w2t, b2r, w3t, b3r)

    return out_pad[:B, :nc]


def mlp_forward(x, w1, b1, w2, b2, w3, b3, *, tb_cap=512, tk_cap=1024):
    """Fused MLP forward.

    x: (B, input_size); weights in PyTorch layout w_i (out, in), b_i (out,).
    tb_cap: max batch tile (rows, 128-aligned). Fewer batch tiles ==> fewer
            passes over the (huge) fc1 weight stream.
    tk_cap: max fc1 input-feature tile (keeps W1 K-tiles VMEM-resident).
    """
    B, in_f = x.shape
    # Fewest 128-aligned batch tiles covering B, capped at tb_cap.
    n_bt = pl.cdiv(B, tb_cap)
    tb = min(tb_cap, _round_up(pl.cdiv(B, n_bt), 128))
    # fc1 K tile: 128-aligned, no larger than the (padded) input dim.
    tk = min(tk_cap, _round_up(in_f, 128))
    return _mlp_forward_impl(x, w1, b1, w2, b2, w3, b3, tb, tk)


def _init_linear(key, out_f, in_f, dtype=jnp.float32):
    """Deterministic PyTorch-style uniform(-1/sqrt(in), 1/sqrt(in)) init."""
    kw, kb = jax.random.split(key)
    bound = 1.0 / jnp.sqrt(jnp.asarray(in_f, dtype))
    w = jax.random.uniform(kw, (out_f, in_f), dtype, -bound, bound)
    b = jax.random.uniform(kb, (out_f,), dtype, -bound, bound)
    return w, b


if __name__ == "__main__":
    # Small shapes consistent with the MLP structure
    # (input -> 2*hidden -> hidden -> num_classes).
    batch = 8
    input_size = 512
    hidden_size = 128
    num_classes = 5

    key = jax.random.PRNGKey(0)
    kx, k1, k2, k3 = jax.random.split(key, 4)

    x = jax.random.normal(kx, (batch, input_size), jnp.float32)
    w1, b1 = _init_linear(k1, hidden_size * 2, input_size)
    w2, b2 = _init_linear(k2, hidden_size, hidden_size * 2)
    w3, b3 = _init_linear(k3, num_classes, hidden_size)

    out = mlp_forward(x, w1, b1, w2, b2, w3, b3)
    out = jax.block_until_ready(out)
    assert out.shape == (batch, num_classes)

    # Reference with the same dtype policy (bf16 MXU operands, f32 accumulate).
    bf = jnp.bfloat16
    h1 = jnp.maximum(
        jnp.dot(x.astype(bf), w1.T.astype(bf),
                preferred_element_type=jnp.float32) + b1, 0.0)
    h2 = jnp.maximum(
        jnp.dot(h1.astype(bf), w2.T.astype(bf),
                preferred_element_type=jnp.float32) + b2, 0.0)
    ref = jnp.dot(h2.astype(bf), w3.T.astype(bf),
                  preferred_element_type=jnp.float32) + b3
    assert jnp.allclose(out, ref, atol=2e-3, rtol=2e-3), \
        float(jnp.max(jnp.abs(out - ref)))

    # Loose sanity check against the pure-f32 PyTorch-equivalent math.
    h1f = jnp.maximum(x @ w1.T + b1, 0.0)
    h2f = jnp.maximum(h1f @ w2.T + b2, 0.0)
    reff = h2f @ w3.T + b3
    assert jnp.allclose(out, reff, atol=5e-2, rtol=5e-2)

    print("KERNEL_OK")
</pallas_src>

<mosaic_0001>
module attributes {stable_mosaic.version = 11 : i64} {
  func.func @mlp_kernel(%arg0: i32, %arg1: i32, %arg2: memref<128x512xbf16, #tpu.memory_space<vmem>>, %arg3: memref<512x256xbf16, #tpu.memory_space<vmem>>, %arg4: memref<1x256xf32, #tpu.memory_space<vmem>>, %arg5: memref<256x128xbf16, #tpu.memory_space<vmem>>, %arg6: memref<1x128xf32, #tpu.memory_space<vmem>>, %arg7: memref<128x128xbf16, #tpu.memory_space<vmem>>, %arg8: memref<1x128xf32, #tpu.memory_space<vmem>>, %arg9: memref<128x128xf32, #tpu.memory_space<vmem>>, %arg10: memref<128x256xf32, #tpu.memory_space<vmem>>) attributes {dimension_semantics = [#tpu.dimension_semantics<parallel>, #tpu.dimension_semantics<arbitrary>], iteration_bounds = array<i64: 1, 1>, scalar_prefetch = 0 : i64, scratch_operands = 1 : i64, tpu.core_type = #tpu.core_type<tc>, window_params = [{transform_indices = @transform_0, window_bounds = array<i64: 128, 512>}, {transform_indices = @transform_1, window_bounds = array<i64: 512, 256>}, {pipeline_mode = #tpu.pipeline_mode<synchronous>, transform_indices = @transform_2, window_bounds = array<i64: 1, 256>}, {pipeline_mode = #tpu.pipeline_mode<synchronous>, transform_indices = @transform_3, window_bounds = array<i64: 256, 128>}, {pipeline_mode = #tpu.pipeline_mode<synchronous>, transform_indices = @transform_4, window_bounds = array<i64: 1, 128>}, {pipeline_mode = #tpu.pipeline_mode<synchronous>, transform_indices = @transform_5, window_bounds = array<i64: 128, 128>}, {pipeline_mode = #tpu.pipeline_mode<synchronous>, transform_indices = @transform_6, window_bounds = array<i64: 1, 128>}, {transform_indices = @transform_7, window_bounds = array<i64: 128, 128>}]} {
    %c0_i32 = arith.constant 0 : i32
    %0 = arith.cmpi eq, %arg1, %c0_i32 : i32
    %1 = arith.extui %0 : i1 to i32
    %c0_i32_0 = arith.constant 0 : i32
    %2 = arith.cmpi ne, %1, %c0_i32_0 : i32
    scf.if %2 {
      %cst_10 = arith.constant 0.000000e+00 : f32
      %12 = vector.broadcast %cst_10 : f32 to vector<128x256xf32>
      %c0_11 = arith.constant 0 : index
      %c0_12 = arith.constant 0 : index
      %13 = vector.load %arg10[%c0_11, %c0_12] : memref<128x256xf32, #tpu.memory_space<vmem>>, vector<128x256xf32>
      tpu.vector_store %arg10[%c0_11, %c0_12], %12 {strides = array<i32>} : memref<128x256xf32, #tpu.memory_space<vmem>>, vector<128x256xf32>,
    } else {
    }
    %c0 = arith.constant 0 : index
    %c0_1 = arith.constant 0 : index
    %3 = vector.load %arg10[%c0, %c0_1] : memref<128x256xf32, #tpu.memory_space<vmem>>, vector<128x256xf32>
    %c0_2 = arith.constant 0 : index
    %c0_3 = arith.constant 0 : index
    %4 = vector.load %arg2[%c0_2, %c0_3] : memref<128x512xbf16, #tpu.memory_space<vmem>>, vector<128x512xbf16>
    %c0_4 = arith.constant 0 : index
    %c0_5 = arith.constant 0 : index
    %5 = vector.load %arg3[%c0_4, %c0_5] : memref<512x256xbf16, #tpu.memory_space<vmem>>, vector<512x256xbf16>
    %cst = arith.constant dense<0.000000e+00> : vector<128x256xf32>
    %6 = tpu.matmul %4, %5, %cst {dimension_numbers = #tpu.dot_dimension_numbers<[1], [0], [0], [1], [0, 0, 1, 1], [], []>} : vector<128x512xbf16>, vector<512x256xbf16>, vector<128x256xf32> -> vector<128x256xf32>
    %7 = arith.addf %3, %6 : vector<128x256xf32>
    %c0_6 = arith.constant 0 : index
    %c0_7 = arith.constant 0 : index
    %8 = vector.load %arg10[%c0_6, %c0_7] : memref<128x256xf32, #tpu.memory_space<vmem>>, vector<128x256xf32>
    tpu.vector_store %arg10[%c0_6, %c0_7], %7 {strides = array<i32>} : memref<128x256xf32, #tpu.memory_space<vmem>>, vector<128x256xf32>,
    %c0_i32_8 = arith.constant 0 : i32
    %9 = arith.cmpi eq, %arg1, %c0_i32_8 : i32
    %10 = arith.extui %9 : i1 to i32
    %c0_i32_9 = arith.constant 0 : i32
    %11 = arith.cmpi ne, %10, %c0_i32_9 : i32
    scf.if %11 {
      %c0_10 = arith.constant 0 : index
      %c0_11 = arith.constant 0 : index
      %12 = vector.load %arg10[%c0_10, %c0_11] : memref<128x256xf32, #tpu.memory_space<vmem>>, vector<128x256xf32>
      %c0_12 = arith.constant 0 : index
      %c0_13 = arith.constant 0 : index
      %13 = vector.load %arg4[%c0_12, %c0_13] : memref<1x256xf32, #tpu.memory_space<vmem>>, vector<1x256xf32>
      %14 = vector.broadcast %13 : vector<1x256xf32> to vector<128x256xf32>
      %15 = arith.addf %12, %14 : vector<128x256xf32>
      %cst_14 = arith.constant 0.000000e+00 : f32
      %16 = vector.broadcast %cst_14 : f32 to vector<128x256xf32>
      %17 = arith.maximumf %15, %16 : vector<128x256xf32>
      %18 = arith.truncf %17 : vector<128x256xf32> to vector<128x256xbf16>
      %c0_15 = arith.constant 0 : index
      %c0_16 = arith.constant 0 : index
      %19 = vector.load %arg5[%c0_15, %c0_16] : memref<256x128xbf16, #tpu.memory_space<vmem>>, vector<256x128xbf16>
      %cst_17 = arith.constant dense<0.000000e+00> : vector<128x128xf32>
      %20 = tpu.matmul %18, %19, %cst_17 {dimension_numbers = #tpu.dot_dimension_numbers<[1], [0], [0], [1], [0, 0, 1, 1], [], []>} : vector<128x256xbf16>, vector<256x128xbf16>, vector<128x128xf32> -> vector<128x128xf32>
      %c0_18 = arith.constant 0 : index
      %c0_19 = arith.constant 0 : index
      %21 = vector.load %arg6[%c0_18, %c0_19] : memref<1x128xf32, #tpu.memory_space<vmem>>, vector<1x128xf32>
      %22 = vector.broadcast %21 : vector<1x128xf32> to vector<128x128xf32>
      %23 = arith.addf %20, %22 : vector<128x128xf32>
      %cst_20 = arith.constant 0.000000e+00 : f32
      %24 = vector.broadcast %cst_20 : f32 to vector<128x128xf32>
      %25 = arith.maximumf %23, %24 : vector<128x128xf32>
      %26 = arith.truncf %25 : vector<128x128xf32> to vector<128x128xbf16>
      %c0_21 = arith.constant 0 : index
      %c0_22 = arith.constant 0 : index
      %27 = vector.load %arg7[%c0_21, %c0_22] : memref<128x128xbf16, #tpu.memory_space<vmem>>, vector<128x128xbf16>
      %cst_23 = arith.constant dense<0.000000e+00> : vector<128x128xf32>
      %28 = tpu.matmul %26, %27, %cst_23 {dimension_numbers = #tpu.dot_dimension_numbers<[1], [0], [0], [1], [0, 0, 1, 1], [], []>} : vector<128x128xbf16>, vector<128x128xbf16>, vector<128x128xf32> -> vector<128x128xf32>
      %c0_24 = arith.constant 0 : index
      %c0_25 = arith.constant 0 : index
      %29 = vector.load %arg8[%c0_24, %c0_25] : memref<1x128xf32, #tpu.memory_space<vmem>>, vector<1x128xf32>
      %30 = vector.broadcast %29 : vector<1x128xf32> to vector<128x128xf32>
      %31 = arith.addf %28, %30 : vector<128x128xf32>
      %c0_26 = arith.constant 0 : index
      %c0_27 = arith.constant 0 : index
      %32 = vector.load %arg9[%c0_26, %c0_27] : memref<128x128xf32, #tpu.memory_space<vmem>>, vector<128x128xf32>
      tpu.vector_store %arg9[%c0_26, %c0_27], %31 {strides = array<i32>} : memref<128x128xf32, #tpu.memory_space<vmem>>, vector<128x128xf32>,
    } else {
    }
    return
  }
  func.func @transform_0(%arg0: i32, %arg1: i32) -> (i32, i32) {
    %c0_i32 = arith.constant 0 : i32
    return %arg0, %arg1 : i32, i32
  }
  func.func @transform_1(%arg0: i32, %arg1: i32) -> (i32, i32) {
    %c0_i32 = arith.constant 0 : i32
    %c0_i32_0 = arith.constant 0 : i32
    return %arg1, %c0_i32 : i32, i32
  }
  func.func @transform_2(%arg0: i32, %arg1: i32) -> (i32, i32) {
    %c0_i32 = arith.constant 0 : i32
    %c0_i32_0 = arith.constant 0 : i32
    %c0_i32_1 = arith.constant 0 : i32
    return %c0_i32, %c0_i32_0 : i32, i32
  }
  func.func @transform_3(%arg0: i32, %arg1: i32) -> (i32, i32) {
    %c0_i32 = arith.constant 0 : i32
    %c0_i32_0 = arith.constant 0 : i32
    %c0_i32_1 = arith.constant 0 : i32
    return %c0_i32, %c0_i32_0 : i32, i32
  }
  func.func @transform_4(%arg0: i32, %arg1: i32) -> (i32, i32) {
    %c0_i32 = arith.constant 0 : i32
    %c0_i32_0 = arith.constant 0 : i32
    %c0_i32_1 = arith.constant 0 : i32
    return %c0_i32, %c0_i32_0 : i32, i32
  }
  func.func @transform_5(%arg0: i32, %arg1: i32) -> (i32, i32) {
    %c0_i32 = arith.constant 0 : i32
    %c0_i32_0 = arith.constant 0 : i32
    %c0_i32_1 = arith.constant 0 : i32
    return %c0_i32, %c0_i32_0 : i32, i32
  }
  func.func @transform_6(%arg0: i32, %arg1: i32) -> (i32, i32) {
    %c0_i32 = arith.constant 0 : i32
    %c0_i32_0 = arith.constant 0 : i32
    %c0_i32_1 = arith.constant 0 : i32
    return %c0_i32, %c0_i32_0 : i32, i32
  }
  func.func @transform_7(%arg0: i32, %arg1: i32) -> (i32, i32) {
    %c0_i32 = arith.constant 0 : i32
    %c0_i32_0 = arith.constant 0 : i32
    return %arg0, %c0_i32 : i32, i32
  }
}

</mosaic_0001>

<bundles_post_ra>
// kernel: _mlp_forward_impl.1
= control target key start
LH: loop header
LB: loop body
LE: loop exit
PB: predicated region body
PF: predicated region fallthrough
CT: control target
= control target key end

     0   :  { %s2477_s1 = inlined_call_operand.vmem [shape: bf16[512,256], index: 1, kind: input, shape index: {}]   ;;  %s2478_s0 = inlined_call_operand.vmem [shape: bf16[128,512], index: 0, kind: input, shape index: {}]   ;;  %s2479_s3 = inlined_call_operand.vmem [shape: bf16[256,128], index: 3, kind: input, shape index: {}]   ;;  %s2480_s5 = inlined_call_operand.vmem [shape: bf16[128,128], index: 5, kind: input, shape index: {}]   ;;  %s2481_s2 = inlined_call_operand.vmem [shape: f32[1,256], index: 2, kind: input, shape index: {}]   ;;  %s2482_s4 = inlined_call_operand.vmem [shape: f32[1,128], index: 4, kind: input, shape index: {}]   ;;  %s2483_s6 = inlined_call_operand.vmem [shape: f32[1,128], index: 6, kind: input, shape index: {}]   ;;  %s2484_s7 = inlined_call_operand.vmem [shape: f32[128,128], index: 7, kind: output, shape index: {}]  }
   0x1   :  { %v1798_v0 = vld [vmem:[%s2477_s1 + $0x4] ss:$8 sps:$4 sm:$0xff]   ;;  %v1800_v1 = vld [vmem:[%s2477_s1] ss:$8 sps:$4 sm:$0xff]   ;;  %v1801_v2 = vld [vmem:[%s2477_s1 + $0x14] ss:$8 sps:$4 sm:$0xff]  }
   0x2   :  { %671 = vmatprep.subr.bf16.mxu0 %v1798_v0  ;;  %v1803_v3 = vld [vmem:[%s2477_s1 + $0x10] ss:$8 sps:$4 sm:$0xff]   ;;  %v1804_v4 = vld [vmem:[%s2477_s1 + $0x24] ss:$8 sps:$4 sm:$0xff]   ;;  %v1806_v5 = vld [vmem:[%s2477_s1 + $0x20] ss:$8 sps:$4 sm:$0xff]  }
   0x3   :  { %672 = vmatpush1.bf16.msra.mxu0 %v1800_v1  ;;  %v1807_v6 = vld [vmem:[%s2477_s1 + $0x34] ss:$8 sps:$4 sm:$0xff]   ;;  %v1809_v7 = vld [vmem:[%s2477_s1 + $0x30] ss:$8 sps:$4 sm:$0xff]   ;;  %v1810_v8 = vld [vmem:[%s2477_s1 + $0x44] ss:$8 sps:$4 sm:$0xff]  }
   0x4   :  { %673 = vmatprep.subr.bf16.mxu0 %v1801_v2  ;;  %v1812_v9 = vld [vmem:[%s2477_s1 + $0x40] ss:$8 sps:$4 sm:$0xff]   ;;  %v1813_v10 = vld [vmem:[%s2477_s1 + $0x54] ss:$8 sps:$4 sm:$0xff]   ;;  %v1815_v11 = vld [vmem:[%s2477_s1 + $0x50] ss:$8 sps:$4 sm:$0xff]  }
   0x5   :  { %v1816_v12 = vld [vmem:[%s2477_s1 + $0x64] ss:$8 sps:$4 sm:$0xff]   ;;  %v1818_v14 = vld [vmem:[%s2477_s1 + $0x60] ss:$8 sps:$4 sm:$0xff]   ;;  %v1819_v15 = vld [vmem:[%s2477_s1 + $0x74] ss:$8 sps:$4 sm:$0xff]  }
   0x6   :  { %v1848_v13 = vld [vmem:[%s2478_s0 + $0x4] ss:$16 sps:$4 sm:$0xff]   ;;  %v1821_v16 = vld [vmem:[%s2477_s1 + $0x70] ss:$8 sps:$4 sm:$0xff]   ;;  %v1824_v18 = vld [vmem:[%s2477_s1 + $0x80] ss:$8 sps:$4 sm:$0xff]  }
   0x7   :  { %674 = vmatpush1.bf16.msra.mxu0 %v1803_v3  ;;  %703 = vmatprep.mubr.bf16.mxu0 %v1848_v13  ;;  %v1822_v17 = vld [vmem:[%s2477_s1 + $0x84] ss:$8 sps:$4 sm:$0xff]   ;;  %v1825_v19 = vld [vmem:[%s2477_s1 + $0x94] ss:$8 sps:$4 sm:$0xff]   ;;  %v1827_v20 = vld [vmem:[%s2477_s1 + $0x90] ss:$8 sps:$4 sm:$0xff]  }
   0x8   :  { %675 = vmatprep.subr.bf16.mxu0 %v1804_v4  ;;  %v1828_v21 = vld [vmem:[%s2477_s1 + $0xa4] ss:$8 sps:$4 sm:$0xff]   ;;  %v1830_v22 = vld [vmem:[%s2477_s1 + $0xa0] ss:$8 sps:$4 sm:$0xff]   ;;  %v1831_v23 = vld [vmem:[%s2477_s1 + $0xb4] ss:$8 sps:$4 sm:$0xff]  }
   0x9   :  { %v1833_v24 = vld [vmem:[%s2477_s1 + $0xb0] ss:$8 sps:$4 sm:$0xff]   ;;  %v1834_v25 = vld [vmem:[%s2477_s1 + $0xc4] ss:$8 sps:$4 sm:$0xff]   ;;  %v1836_v26 = vld [vmem:[%s2477_s1 + $0xc0] ss:$8 sps:$4 sm:$0xff]  }
   0xa   :  { %v1837_v27 = vld [vmem:[%s2477_s1 + $0xd4] ss:$8 sps:$4 sm:$0xff]   ;;  %v1839_v28 = vld [vmem:[%s2477_s1 + $0xd0] ss:$8 sps:$4 sm:$0xff]   ;;  %v1840_v29 = vld [vmem:[%s2477_s1 + $0xe4] ss:$8 sps:$4 sm:$0xff]  }
   0xb   :  { %676 = vmatpush1.bf16.msra.mxu0 %v1806_v5  ;;  %v1842_v30 = vld [vmem:[%s2477_s1 + $0xe0] ss:$8 sps:$4 sm:$0xff]   ;;  %v1843_v31 = vld [vmem:[%s2477_s1 + $0xf4] ss:$8 sps:$4 sm:$0xff]   ;;  %v1845_v32 = vld [vmem:[%s2477_s1 + $0xf0] ss:$8 sps:$4 sm:$0xff]  }
   0xc   :  { %677 = vmatprep.subr.bf16.mxu0 %v1807_v6  ;;  %v1851_v33 = vld [vmem:[%s2477_s1 + $0x104] ss:$8 sps:$4 sm:$0xff]   ;;  %v1846_v34 = vld [vmem:[%s2478_s0] ss:$16 sps:$4 sm:$0xff]   ;;  %v1854_v36 = vld [vmem:[%s2477_s1 + $0x114] ss:$8 sps:$4 sm:$0xff]  }
   0xd   :  { %v1849_v35 = vld [vmem:[%s2477_s1 + $0x100] ss:$8 sps:$4 sm:$0xff]   ;;  %v1855_v37 = vld [vmem:[%s2478_s0 + $0x24] ss:$16 sps:$4 sm:$0xff]   ;;  %v1852_v39 = vld [vmem:[%s2477_s1 + $0x110] ss:$8 sps:$4 sm:$0xff]  }
   0xe   :  { %v1942_v38 = vld [vmem:[%s2479_s3 + $0x40] sm:$0xff]   ;;  %v1944_v41 = vld [vmem:[%s2479_s3 + $0x48] sm:$0xff]   ;;  %v1946_v46 = vld [vmem:[%s2479_s3 + $0x50] sm:$0xff]  }
   0xf   :  { %678 = vmatpush1.bf16.msra.mxu0 %v1809_v7  ;;  %v1943_v40 = vld [vmem:[%s2479_s3] sm:$0xff]   ;;  %1654 = vmatprep.subr.bf16.mxu1 %v1942_v38  ;;  %v1945_v44 = vld [vmem:[%s2479_s3 + $0x8] sm:$0xff]   ;;  %v1863_v47 = vld [vmem:[%s2477_s1 + $0x134] ss:$8 sps:$4 sm:$0xff]  }
  0x10   :  { %679 = vmatprep.subr.bf16.mxu0 %v1810_v8  ;;  %v1860_v42 = vld [vmem:[%s2477_s1 + $0x124] ss:$8 sps:$4 sm:$0xff]   ;;  %v1857_v43 = vld [vmem:[%s2478_s0 + $0x20] ss:$16 sps:$4 sm:$0xff]   ;;  %1655 = vmatpush3.bf16.msra.mxu1 %v1943_v40  ;;  %v1948_v51 = vld [vmem:[%s2479_s3 + $0x58] sm:$0xff]  }
  0x11   :  { %v1858_v45 = vld [vmem:[%s2477_s1 + $0x120] ss:$8 sps:$4 sm:$0xff]   ;;  %1656 = vmatprep.subr.bf16.mxu1 %v1944_v41  ;;  %v1864_v48 = vld [vmem:[%s2478_s0 + $0x44] ss:$16 sps:$4 sm:$0xff]   ;;  %v1861_v50 = vld [vmem:[%s2477_s1 + $0x130] ss:$8 sps:$4 sm:$0xff]  }
  0x12   :  { %v1947_v49 = vld [vmem:[%s2479_s3 + $0x10] sm:$0xff]   ;;  %v1869_v52 = vld [vmem:[%s2477_s1 + $0x144] ss:$8 sps:$4 sm:$0xff]   ;;  %v1949_v53 = vld [vmem:[%s2479_s3 + $0x18] sm:$0xff]  }
  0x13   :  { %680 = vmatpush1.bf16.msra.mxu0 %v1812_v9  ;;  %v1950_v54 = vld [vmem:[%s2479_s3 + $0x60] sm:$0xff]   ;;  %v1872_v58 = vld [vmem:[%s2477_s1 + $0x154] ss:$8 sps:$4 sm:$0xff]   ;;  %v1952_v60 = vld [vmem:[%s2479_s3 + $0x68] sm:$0xff]  }
  0x14   :  { %681 = vmatprep.subr.bf16.mxu0 %v1813_v10  ;;  %1657 = vmatpush3.bf16.msra.mxu1 %v1945_v44  ;;  %v1866_v55 = vld [vmem:[%s2478_s0 + $0x40] ss:$16 sps:$4 sm:$0xff]   ;;  %v1873_v57 = vld [vmem:[%s2478_s0 + $0x64] ss:$16 sps:$4 sm:$0xff]   ;;  %v1935_v38 = vld [vmem:[%s2478_s0 + $0xa8] ss:$16 sps:$4 sm:$0xff]  }
  0x15   :  { %1658 = vmatprep.subr.bf16.mxu1 %v1946_v46  ;;  %v1867_v56 = vld [vmem:[%s2477_s1 + $0x140] ss:$8 sps:$4 sm:$0xff]   ;;  %v1870_v61 = vld [vmem:[%s2477_s1 + $0x150] ss:$8 sps:$4 sm:$0xff]   ;;  %v1878_v62 = vld [vmem:[%s2477_s1 + $0x164] ss:$8 sps:$4 sm:$0xff]  }
  0x16   :  { %v1951_v59 = vld [vmem:[%s2479_s3 + $0x20] sm:$0xff]   ;;  %v1881_v2 = vld [vmem:[%s2477_s1 + $0x174] ss:$8 sps:$4 sm:$0xff]   ;;  %v1879_v3 = vld [vmem:[%s2477_s1 + $0x170] ss:$8 sps:$4 sm:$0xff]  }
  0x17   :  { %682 = vmatpush1.bf16.msra.mxu0 %v1815_v11  ;;  %v1875_v63 = vld [vmem:[%s2478_s0 + $0x60] ss:$16 sps:$4 sm:$0xff]   ;;  %v1882_v1 = vld [vmem:[%s2478_s0 + $0x84] ss:$16 sps:$4 sm:$0xff]   ;;  %v1938_v40 = vld [vmem:[%s2478_s0 + $0xc8] ss:$16 sps:$4 sm:$0xff]  }
  0x18   :  { %683 = vmatprep.subr.bf16.mxu0 %v1816_v12  ;;  %1659 = vmatpush3.bf16.msra.mxu1 %v1947_v49  ;;  %v1876_v0 = vld [vmem:[%s2477_s1 + $0x160] ss:$8 sps:$4 sm:$0xff]   ;;  %v1887_v4 = vld [vmem:[%s2477_s1 + $0x184] ss:$8 sps:$4 sm:$0xff]   ;;  %v1890_v8 = vld [vmem:[%s2477_s1 + $0x194] ss:$8 sps:$4 sm:$0xff]   ;;  %v998_v49 = vlaneseq }
  0x19   :  { %1660 = vmatprep.subr.bf16.mxu1 %v1948_v51  ;;  %v1884_v5 = vld [vmem:[%s2478_s0 + $0x80] ss:$16 sps:$4 sm:$0xff]   ;;  %v1891_v7 = vld [vmem:[%s2478_s0 + $0xa4] ss:$16 sps:$4 sm:$0xff]   ;;  %v1939_v41 = vld [vmem:[%s2478_s0 + $0xec] ss:$16 sps:$4 sm:$0xff]  }
  0x1a   :  { %v1885_v6 = vld [vmem:[%s2477_s1 + $0x180] ss:$8 sps:$4 sm:$0xff]   ;;  %v1888_v9 = vld [vmem:[%s2477_s1 + $0x190] ss:$8 sps:$4 sm:$0xff]   ;;  %v1896_v10 = vld [vmem:[%s2477_s1 + $0x1a4] ss:$8 sps:$4 sm:$0xff]  }
  0x1b   :  { %684 = vmatpush1.bf16.msra.mxu0 %v1818_v14  ;;  %v1893_v11 = vld [vmem:[%s2478_s0 + $0xa0] ss:$16 sps:$4 sm:$0xff]   ;;  %v1900_v13 = vld [vmem:[%s2478_s0 + $0xc4] ss:$16 sps:$4 sm:$0xff]   ;;  %v1956_v46 = vld [vmem:[%s2479_s3 + $0x78] sm:$0xff]  }
  0x1c   :  { %685 = vmatprep.subr.bf16.mxu0 %v1819_v15  ;;  %1661 = vmatpush3.bf16.msra.mxu1 %v1949_v53  ;;  %v1894_v12 = vld [vmem:[%s2477_s1 + $0x1a0] ss:$8 sps:$4 sm:$0xff]   ;;  %v1899_v14 = vld [vmem:[%s2477_s1 + $0x1b4] ss:$8 sps:$4 sm:$0xff]   ;;  %v1897_v15 = vld [vmem:[%s2477_s1 + $0x1b0] ss:$8 sps:$4 sm:$0xff]  }
  0x1d   :  { %1662 = vmatprep.subr.bf16.mxu1 %v1950_v54  ;;  %v1954_v44 = vld [vmem:[%s2479_s3 + $0x70] sm:$0xff]  }
  0x1f   :  { %686 = vmatpush1.bf16.msra.mxu0 %v1821_v16  ;;  %v1905_v16 = vld [vmem:[%s2477_s1 + $0x1c4] ss:$8 sps:$4 sm:$0xff]  }
  0x20   :  { %687 = vmatprep.subr.bf16.mxu0 %v1822_v17  ;;  %1663 = vmatpush3.bf16.msra.mxu1 %v1951_v59  ;;  %v1902_v17 = vld [vmem:[%s2478_s0 + $0xc0] ss:$16 sps:$4 sm:$0xff]  }
  0x21   :  { %1664 = vmatprep.subr.bf16.mxu1 %v1952_v60 }
  0x23   :  { %688 = vmatpush1.bf16.msra.mxu0 %v1824_v18  ;;  %v1903_v18 = vld [vmem:[%s2477_s1 + $0x1c0] ss:$8 sps:$4 sm:$0xff]  }
  0x24   :  { %689 = vmatprep.subr.bf16.mxu0 %v1825_v19  ;;  %v1909_v19 = vld [vmem:[%s2478_s0 + $0xe4] ss:$16 sps:$4 sm:$0xff]  }
  0x27   :  { %690 = vmatpush1.bf16.msra.mxu0 %v1827_v20  ;;  %v1908_v20 = vld [vmem:[%s2477_s1 + $0x1d4] ss:$8 sps:$4 sm:$0xff]  }
  0x28   :  { %691 = vmatprep.subr.bf16.mxu0 %v1828_v21  ;;  %v1906_v21 = vld [vmem:[%s2477_s1 + $0x1d0] ss:$8 sps:$4 sm:$0xff]  }
  0x2b   :  { %692 = vmatpush1.bf16.msra.mxu0 %v1830_v22  ;;  %v1914_v22 = vld [vmem:[%s2477_s1 + $0x1e4] ss:$8 sps:$4 sm:$0xff]  }
  0x2c   :  { %693 = vmatprep.subr.bf16.mxu0 %v1831_v23  ;;  %v1911_v23 = vld [vmem:[%s2478_s0 + $0xe0] ss:$16 sps:$4 sm:$0xff]  }
  0x2f   :  { %694 = vmatpush1.bf16.msra.mxu0 %v1833_v24  ;;  %v1912_v24 = vld [vmem:[%s2477_s1 + $0x1e0] ss:$8 sps:$4 sm:$0xff]  }
  0x30   :  { %695 = vmatprep.subr.bf16.mxu0 %v1834_v25  ;;  %v1920_v25 = vld [vmem:[%s2478_s0 + $0xc] ss:$16 sps:$4 sm:$0xff]  }
  0x33   :  { %696 = vmatpush1.bf16.msra.mxu0 %v1836_v26  ;;  %v1917_v26 = vld [vmem:[%s2477_s1 + $0x1f4] ss:$8 sps:$4 sm:$0xff]  }
  0x34   :  { %697 = vmatprep.subr.bf16.mxu0 %v1837_v27  ;;  %v1915_v27 = vld [vmem:[%s2477_s1 + $0x1f0] ss:$8 sps:$4 sm:$0xff]  }
  0x37   :  { %698 = vmatpush1.bf16.msra.mxu0 %v1839_v28  ;;  %v1918_v28 = vld [vmem:[%s2478_s0 + $0x8] ss:$16 sps:$4 sm:$0xff]  }
  0x38   :  { %699 = vmatprep.subr.bf16.mxu0 %v1840_v29  ;;  %v1921_v29 = vld [vmem:[%s2478_s0 + $0x2c] ss:$16 sps:$4 sm:$0xff]  }
  0x3b   :  { %700 = vmatpush1.bf16.msra.mxu0 %v1842_v30  ;;  %v1923_v30 = vld [vmem:[%s2478_s0 + $0x28] ss:$16 sps:$4 sm:$0xff]  }
  0x3c   :  { %701 = vmatprep.subr.bf16.mxu0 %v1843_v31  ;;  %v1924_v31 = vld [vmem:[%s2478_s0 + $0x4c] ss:$16 sps:$4 sm:$0xff]  }
  0x3f   :  { %702 = vmatpush1.bf16.msra.mxu0 %v1845_v32  ;;  %v1926_v32 = vld [vmem:[%s2478_s0 + $0x48] ss:$16 sps:$4 sm:$0xff]  }
  0x40   :  { %784 = vmatprep.subr.bf16.mxu0 %v1851_v33  ;;  %v1927_v33 = vld [vmem:[%s2478_s0 + $0x6c] ss:$16 sps:$4 sm:$0xff]  }
  0x42   :  { %704 = vmatmul.mubr.bf16.vlgmr.msra.gmra.mrb[0].mxu0 %v1846_v34  ;;  %v1929_v34 = vld [vmem:[%s2478_s0 + $0x68] ss:$16 sps:$4 sm:$0xff]  }
  0x43   :  { %785 = vmatpush1.bf16.msra.mxu0 %v1849_v35  ;;  %713 = vmatprep.mubr.bf16.mxu0 %v1855_v37  ;;  %v1930_v35 = vld [vmem:[%s2478_s0 + $0x8c] ss:$16 sps:$4 sm:$0xff]  }
  0x44   :  { %786 = vmatprep.subr.bf16.mxu0 %v1854_v36  ;;  %v1932_v36 = vld [vmem:[%s2478_s0 + $0x88] ss:$16 sps:$4 sm:$0xff]   ;;  %v1933_v37 = vld [vmem:[%s2478_s0 + $0xac] ss:$16 sps:$4 sm:$0xff]  }
  0x47   :  { %787 = vmatpush1.bf16.msra.mxu0 %v1852_v39  ;;  %v1936_v39 = vld [vmem:[%s2478_s0 + $0xcc] ss:$16 sps:$4 sm:$0xff]  }
  0x48   :  { %788 = vmatprep.subr.bf16.mxu0 %v1860_v42  ;;  %v1941_v42 = vld [vmem:[%s2478_s0 + $0xe8] ss:$16 sps:$4 sm:$0xff]  }
  0x4a   :  { %714 = vmatmul.mubr.bf16.gmra.mrb[4].mxu0 %v1857_v43  ;;  %v1953_v43 = vld [vmem:[%s2479_s3 + $0x28] sm:$0xff]  }
  0x4b   :  { %789 = vmatpush1.bf16.msra.mxu0 %v1858_v45  ;;  %723 = vmatprep.mubr.bf16.mxu0 %v1864_v48  ;;  %v1955_v45 = vld [vmem:[%s2479_s3 + $0x30] sm:$0xff]   ;;  %v1958_v48 = vld [vmem:[%s2480_s5] sm:$0xff]  }
  0x4c   :  { %790 = vmatprep.subr.bf16.mxu0 %v1863_v47  ;;  %1665 = vmatpush3.bf16.msra.mxu1 %v1953_v43  ;;  %v1957_v47 = vld [vmem:[%s2479_s3 + $0x38] sm:$0xff]  }
  0x4d   :  { %1666 = vmatprep.subr.bf16.mxu1 %v1954_v44 }
  0x4f   :  { %791 = vmatpush1.bf16.msra.mxu0 %v1861_v50  ;;  %v999_v50 = vshrl.u32 %v998_v49, 7 }
  0x50   :  { %792 = vmatprep.subr.bf16.mxu0 %v1869_v52  ;;  %1667 = vmatpush3.bf16.msra.mxu1 %v1955_v45  ;;  %v996_v52 = vld [vmem:[%s2481_s2] sm:$0x3] }
  0x51   :  { %1668 = vmatprep.subr.bf16.mxu1 %v1956_v46  ;;  %v1000_v51 = vsub.s32 0, %v999_v50  ;;  %v1004_v53 = vsub.s32 1, %v999_v50 }
  0x52   :  { %724 = vmatmul.mubr.bf16.gmra.mrb[8].mxu0 %v1866_v55 }
  0x53   :  { %793 = vmatpush1.bf16.msra.mxu0 %v1867_v56  ;;  %733 = vmatprep.mubr.bf16.mxu0 %v1873_v57  ;;  %v2348_v54 = vrot.slane %v996_v52, %v1000_v51  ;;  %v2350_v55 = vrot.slane %v996_v52, %v1004_v53 }
  0x54   :  { %794 = vmatprep.subr.bf16.mxu0 %v1872_v58  ;;  %1669 = vmatpush3.bf16.msra.mxu1 %v1957_v47 }
  0x55   :  { %1734 = vmatprep.subr.bf16.mxu1 %v1958_v48 }
  0x57   :  { %795 = vmatpush1.bf16.msra.mxu0 %v1870_v61 }
  0x58   :  { %796 = vmatprep.subr.bf16.mxu0 %v1878_v62 }
  0x5a   :  { %734 = vmatmul.mubr.bf16.gmra.mrb[12].mxu0 %v1875_v63 }
  0x5b   :  { %797 = vmatpush1.bf16.msra.mxu0 %v1876_v0  ;;  %743 = vmatprep.mubr.bf16.mxu0 %v1882_v1 }
  0x5c   :  { %798 = vmatprep.subr.bf16.mxu0 %v1881_v2 }
  0x5f   :  { %799 = vmatpush1.bf16.msra.mxu0 %v1879_v3 }
  0x60   :  { %800 = vmatprep.subr.bf16.mxu0 %v1887_v4 }
  0x62   :  { %744 = vmatmul.mubr.bf16.gmra.mrb[16].mxu0 %v1884_v5 }
  0x63   :  { %801 = vmatpush1.bf16.msra.mxu0 %v1885_v6  ;;  %753 = vmatprep.mubr.bf16.mxu0 %v1891_v7 }
  0x64   :  { %802 = vmatprep.subr.bf16.mxu0 %v1890_v8 }
  0x67   :  { %803 = vmatpush1.bf16.msra.mxu0 %v1888_v9  ;;  %v1959_v9 = vld [vmem:[%s2480_s5 + $0x8] sm:$0xff]  }
  0x68   :  { %804 = vmatprep.subr.bf16.mxu0 %v1896_v10 }
  0x6a   :  { %754 = vmatmul.mubr.bf16.gmra.mrb[20].mxu0 %v1893_v11 }
  0x6b   :  { %805 = vmatpush1.bf16.msra.mxu0 %v1894_v12  ;;  %763 = vmatprep.mubr.bf16.mxu0 %v1900_v13 }
  0x6c   :  { %806 = vmatprep.subr.bf16.mxu0 %v1899_v14 }
  0x6f   :  { %807 = vmatpush1.bf16.msra.mxu0 %v1897_v15 }
  0x70   :  { %808 = vmatprep.subr.bf16.mxu0 %v1905_v16 }
  0x72   :  { %764 = vmatmul.mubr.bf16.gmra.mrb[24].mxu0 %v1902_v17  ;;  %v1960_v17 = vld [vmem:[%s2480_s5 + $0x10] sm:$0xff]  }
  0x73   :  { %809 = vmatpush1.bf16.msra.mxu0 %v1903_v18  ;;  %773 = vmatprep.mubr.bf16.mxu0 %v1909_v19 }
  0x74   :  { %810 = vmatprep.subr.bf16.mxu0 %v1908_v20 }
  0x77   :  { %811 = vmatpush1.bf16.msra.mxu0 %v1906_v21 }
  0x78   :  { %812 = vmatprep.subr.bf16.mxu0 %v1914_v22 }
  0x7a   :  { %774 = vmatmul.mubr.bf16.gmra.mrb[28].mxu0 %v1911_v23 }
  0x7b   :  { %813 = vmatpush1.bf16.msra.mxu0 %v1912_v24  ;;  %816 = vmatprep.mubr.bf16.mxu0 %v1920_v25 }
  0x7c   :  { %814 = vmatprep.subr.bf16.mxu0 %v1917_v26 }
  0x7f   :  { %815 = vmatpush1.bf16.msra.mxu0 %v1915_v27 }
  0x82   :  { %817 = vmatmul.mubr.bf16.vlgmr.msra.gmra.mrb[0].mxu0 %v1918_v28 }
  0x83   :  { %826 = vmatprep.mubr.bf16.mxu0 %v1921_v29 }
  0x8a   :  { %827 = vmatmul.mubr.bf16.gmra.mrb[4].mxu0 %v1923_v30 }
  0x8b   :  { %836 = vmatprep.mubr.bf16.mxu0 %v1924_v31 }
  0x92   :  { %837 = vmatmul.mubr.bf16.gmra.mrb[8].mxu0 %v1926_v32 }
  0x93   :  { %846 = vmatprep.mubr.bf16.mxu0 %v1927_v33 }
  0x9a   :  { %847 = vmatmul.mubr.bf16.gmra.mrb[12].mxu0 %v1929_v34 }
  0x9b   :  { %856 = vmatprep.mubr.bf16.mxu0 %v1930_v35 }
  0xa2   :  { %857 = vmatmul.mubr.bf16.gmra.mrb[16].mxu0 %v1932_v36 }
  0xa3   :  { %866 = vmatprep.mubr.bf16.mxu0 %v1933_v37 }
  0xaa   :  { %867 = vmatmul.mubr.bf16.gmra.mrb[20].mxu0 %v1935_v38 }
  0xab   :  { %876 = vmatprep.mubr.bf16.mxu0 %v1936_v39 }
  0xb2   :  { %877 = vmatmul.mubr.bf16.gmra.mrb[24].mxu0 %v1938_v40 }
  0xb3   :  { %886 = vmatprep.mubr.bf16.mxu0 %v1939_v41 }
  0xba   :  { %887 = vmatmul.mubr.bf16.gmra.mrb[28].mxu0 %v1941_v42 }
 0x155   :  { %v818_v56 = vpop.f32.mrb[0].mxu0 }
 0x156   :  { %v1008_v57 = vadd.f32 %v2348_v54, %v818_v56  ;;  %v820_v58 = vpop.f32.mrb[1].mxu0 }
 0x157   :  { %v1009_v59 = vadd.f32 %v2350_v55, %v820_v58  ;;  %v822_v60 = vpop.f32.mrb[2].mxu0 }
 0x158   :  { %v1010_v61 = vadd.f32 %v2348_v54, %v822_v60  ;;  %v824_v62 = vpop.f32.mrb[3].mxu0  ;;  %v1040_v0 = vmax.f32 %v1008_v57, 0.0 }
 0x159   :  { %v1011_v63 = vadd.f32 %v2350_v55, %v824_v62  ;;  %v1041_v2 = vmax.f32 %v1009_v59, 0.0 }
 0x15a   :  { %v1042_v1 = vmax.f32 %v1010_v61, 0.0 }
 0x15b   :  { %v1043_v3 = vmax.f32 %v1011_v63, 0.0 }
 0x15c   :  { %v1072_v4 = vpack.c.bf16 %v1042_v1, %v1040_v0 }
 0x15d   :  { %v828_v5 = vpop.f32.mrb[4].mxu0  ;;  %v1073_v6 = vpack.c.bf16 %v1043_v3, %v1041_v2 }
 0x15e   :  { %v1012_v7 = vadd.f32 %v2348_v54, %v828_v5  ;;  %v830_v8 = vpop.f32.mrb[5].mxu0 }
 0x15f   :  { %v1013_v10 = vadd.f32 %v2350_v55, %v830_v8  ;;  %v832_v11 = vpop.f32.mrb[6].mxu0  ;;  %1255 = vmatprep.mubr.bf16.mxu1 %v1073_v6 }
 0x160   :  { %v1014_v12 = vadd.f32 %v2348_v54, %v832_v11  ;;  %v834_v13 = vpop.f32.mrb[7].mxu0  ;;  %1256 = vmatmul.mubr.bf16.vlgmr.msra.gmra.mrb[0].mxu1 %v1072_v4  ;;  %v1044_v15 = vmax.f32 %v1012_v7, 0.0 }
 0x161   :  { %v1015_v14 = vadd.f32 %v2350_v55, %v834_v13  ;;  %1735 = vmatpush3.bf16.msra.mxu1 %v1958_v48  ;;  %v1045_v18 = vmax.f32 %v1013_v10, 0.0 }
 0x162   :  { %v1046_v16 = vmax.f32 %v1014_v12, 0.0  ;;  %1736 = vmatprep.subr.bf16.mxu1 %v1959_v9 }
 0x163   :  { %v1047_v19 = vmax.f32 %v1015_v14, 0.0 }
 0x164   :  { %v1074_v20 = vpack.c.bf16 %v1046_v16, %v1044_v15 }
 0x165   :  { %v1075_v21 = vpack.c.bf16 %v1047_v19, %v1045_v18  ;;  %v838_v22 = vpop.f32.mrb[8].mxu0  ;;  %1737 = vmatpush3.bf16.msra.mxu1 %v1959_v9 }
 0x166   :  { %v1016_v23 = vadd.f32 %v2348_v54, %v838_v22  ;;  %v840_v24 = vpop.f32.mrb[9].mxu0  ;;  %1738 = vmatprep.subr.bf16.mxu1 %v1960_v17 }
 0x167   :  { %v1017_v25 = vadd.f32 %v2350_v55, %v840_v24  ;;  %v842_v26 = vpop.f32.mrb[10].mxu0  ;;  %1263 = vmatprep.mubr.bf16.mxu1 %v1075_v21 }
 0x168   :  { %v1018_v27 = vadd.f32 %v2348_v54, %v842_v26  ;;  %v844_v28 = vpop.f32.mrb[11].mxu0  ;;  %1264 = vmatmul.mubr.bf16.gmra.mrb[4].mxu1 %v1074_v20  ;;  %v1048_v30 = vmax.f32 %v1016_v23, 0.0 }
 0x169   :  { %v1019_v29 = vadd.f32 %v2350_v55, %v844_v28  ;;  %1739 = vmatpush3.bf16.msra.mxu1 %v1960_v17  ;;  %v1049_v32 = vmax.f32 %v1017_v25, 0.0 }
 0x16a   :  { %v1050_v31 = vmax.f32 %v1018_v27, 0.0 }
 0x16b   :  { %v1051_v33 = vmax.f32 %v1019_v29, 0.0 }
 0x16c   :  { %v1076_v34 = vpack.c.bf16 %v1050_v31, %v1048_v30 }
 0x16d   :  { %v1077_v35 = vpack.c.bf16 %v1051_v33, %v1049_v32  ;;  %v848_v36 = vpop.f32.mrb[12].mxu0 }
 0x16e   :  { %v1020_v37 = vadd.f32 %v2348_v54, %v848_v36  ;;  %v850_v38 = vpop.f32.mrb[13].mxu0 }
 0x16f   :  { %v1021_v39 = vadd.f32 %v2350_v55, %v850_v38  ;;  %v852_v40 = vpop.f32.mrb[14].mxu0  ;;  %1271 = vmatprep.mubr.bf16.mxu1 %v1077_v35 }
 0x170   :  { %v1022_v41 = vadd.f32 %v2348_v54, %v852_v40  ;;  %v854_v42 = vpop.f32.mrb[15].mxu0  ;;  %1272 = vmatmul.mubr.bf16.gmra.mrb[8].mxu1 %v1076_v34  ;;  %v1052_v44 = vmax.f32 %v1020_v37, 0.0 }
 0x171   :  { %v1023_v43 = vadd.f32 %v2350_v55, %v854_v42  ;;  %v1053_v46 = vmax.f32 %v1021_v39, 0.0 }
 0x172   :  { %v1054_v45 = vmax.f32 %v1022_v41, 0.0 }
 0x173   :  { %v1055_v47 = vmax.f32 %v1023_v43, 0.0 }
 0x174   :  { %v1078_v48 = vpack.c.bf16 %v1054_v45, %v1052_v44  ;;  %v1961_v44 = vld [vmem:[%s2480_s5 + $0x18] sm:$0xff]   ;;  %v1964_v45 = vld [vmem:[%s2480_s5 + $0x30] sm:$0xff]  }
 0x175   :  { %v1079_v49 = vpack.c.bf16 %v1055_v47, %v1053_v46  ;;  %v858_v50 = vpop.f32.mrb[16].mxu0  ;;  %1740 = vmatprep.subr.bf16.mxu1 %v1961_v44  ;;  %v1965_v46 = vld [vmem:[%s2480_s5 + $0x38] sm:$0xff]  }
 0x176   :  { %v1024_v51 = vadd.f32 %v2348_v54, %v858_v50  ;;  %v860_v52 = vpop.f32.mrb[17].mxu0  ;;  %1741 = vmatpush3.bf16.msra.mxu1 %v1961_v44 }
 0x177   :  { %v1025_v53 = vadd.f32 %v2350_v55, %v860_v52  ;;  %v862_v56 = vpop.f32.mrb[18].mxu0  ;;  %1279 = vmatprep.mubr.bf16.mxu1 %v1079_v49 }
 0x178   :  { %v1026_v57 = vadd.f32 %v2348_v54, %v862_v56  ;;  %v864_v58 = vpop.f32.mrb[19].mxu0  ;;  %1280 = vmatmul.mubr.bf16.gmra.mrb[12].mxu1 %v1078_v48  ;;  %v1056_v60 = vmax.f32 %v1024_v51, 0.0  ;;  %v2408_v48 = vld [vmem:[%s2482_s4] ss:$0 sm:$0xff] }
 0x179   :  { %v1027_v59 = vadd.f32 %v2350_v55, %v864_v58  ;;  %v1057_v62 = vmax.f32 %v1025_v53, 0.0 }
 0x17a   :  { %v1058_v61 = vmax.f32 %v1026_v57, 0.0 }
 0x17b   :  { %v1059_v63 = vmax.f32 %v1027_v59, 0.0 }
 0x17c   :  { %v1080_v0 = vpack.c.bf16 %v1058_v61, %v1056_v60 }
 0x17d   :  { %v1081_v1 = vpack.c.bf16 %v1059_v63, %v1057_v62  ;;  %v868_v2 = vpop.f32.mrb[20].mxu0 }
 0x17e   :  { %v1028_v3 = vadd.f32 %v2348_v54, %v868_v2  ;;  %v870_v4 = vpop.f32.mrb[21].mxu0 }
 0x17f   :  { %v1029_v5 = vadd.f32 %v2350_v55, %v870_v4  ;;  %v872_v6 = vpop.f32.mrb[22].mxu0  ;;  %1287 = vmatprep.mubr.bf16.mxu1 %v1081_v1 }
 0x180   :  { %v1030_v7 = vadd.f32 %v2348_v54, %v872_v6  ;;  %v874_v8 = vpop.f32.mrb[23].mxu0  ;;  %1288 = vmatmul.mubr.bf16.gmra.mrb[16].mxu1 %v1080_v0  ;;  %v1060_v10 = vmax.f32 %v1028_v3, 0.0 }
 0x181   :  { %v1031_v9 = vadd.f32 %v2350_v55, %v874_v8  ;;  %v1061_v12 = vmax.f32 %v1029_v5, 0.0 }
 0x182   :  { %v1062_v11 = vmax.f32 %v1030_v7, 0.0 }
 0x183   :  { %v1063_v13 = vmax.f32 %v1031_v9, 0.0 }
 0x184   :  { %v1082_v14 = vpack.c.bf16 %v1062_v11, %v1060_v10 }
 0x185   :  { %v1083_v15 = vpack.c.bf16 %v1063_v13, %v1061_v12  ;;  %v878_v16 = vpop.f32.mrb[24].mxu0 }
 0x186   :  { %v1032_v17 = vadd.f32 %v2348_v54, %v878_v16  ;;  %v880_v18 = vpop.f32.mrb[25].mxu0 }
 0x187   :  { %v1033_v19 = vadd.f32 %v2350_v55, %v880_v18  ;;  %v882_v20 = vpop.f32.mrb[26].mxu0  ;;  %1295 = vmatprep.mubr.bf16.mxu1 %v1083_v15 }
 0x188   :  { %v1034_v21 = vadd.f32 %v2348_v54, %v882_v20  ;;  %v884_v22 = vpop.f32.mrb[27].mxu0  ;;  %1296 = vmatmul.mubr.bf16.gmra.mrb[20].mxu1 %v1082_v14  ;;  %v1064_v24 = vmax.f32 %v1032_v17, 0.0 }
 0x189   :  { %v1035_v23 = vadd.f32 %v2350_v55, %v884_v22  ;;  %v1065_v26 = vmax.f32 %v1033_v19, 0.0 }
 0x18a   :  { %v1066_v25 = vmax.f32 %v1034_v21, 0.0 }
 0x18b   :  { %v1067_v27 = vmax.f32 %v1035_v23, 0.0 }
 0x18c   :  { %v1084_v28 = vpack.c.bf16 %v1066_v25, %v1064_v24 }
 0x18d   :  { %v1085_v29 = vpack.c.bf16 %v1067_v27, %v1065_v26  ;;  %v888_v30 = vpop.f32.mrb[28].mxu0 }
 0x18e   :  { %v1036_v31 = vadd.f32 %v2348_v54, %v888_v30  ;;  %v890_v32 = vpop.f32.mrb[29].mxu0 }
 0x18f   :  { %v1037_v33 = vadd.f32 %v2350_v55, %v890_v32  ;;  %v892_v34 = vpop.f32.mrb[30].mxu0  ;;  %1303 = vmatprep.mubr.bf16.mxu1 %v1085_v29 }
 0x190   :  { %v1038_v35 = vadd.f32 %v2348_v54, %v892_v34  ;;  %v894_v36 = vpop.f32.mrb[31].mxu0  ;;  %1304 = vmatmul.mubr.bf16.gmra.mrb[24].mxu1 %v1084_v28  ;;  %v1068_v38 = vmax.f32 %v1036_v31, 0.0  ;;  %v1962_v54 = vld [vmem:[%s2480_s5 + $0x20] sm:$0xff]  }
 0x191   :  { %v1039_v37 = vadd.f32 %v2350_v55, %v894_v36  ;;  %v1069_v40 = vmax.f32 %v1037_v33, 0.0  ;;  %1742 = vmatprep.subr.bf16.mxu1 %v1962_v54  ;;  %v1963_v55 = vld [vmem:[%s2480_s5 + $0x28] sm:$0xff]  }
 0x192   :  { %v1070_v39 = vmax.f32 %v1038_v35, 0.0  ;;  %1743 = vmatpush3.bf16.msra.mxu1 %v1962_v54 }
 0x193   :  { %v1071_v41 = vmax.f32 %v1039_v37, 0.0  ;;  %1744 = vmatprep.subr.bf16.mxu1 %v1963_v55 }
 0x194   :  { %v1086_v42 = vpack.c.bf16 %v1070_v39, %v1068_v38 }
 0x195   :  { %v1087_v43 = vpack.c.bf16 %v1071_v41, %v1069_v40 }
 0x196   :  { %1745 = vmatpush3.bf16.msra.mxu1 %v1963_v55 }
 0x197   :  { %1311 = vmatprep.mubr.bf16.mxu1 %v1087_v43  ;;  %1746 = vmatprep.subr.bf16.mxu1 %v1964_v45 }
 0x198   :  { %1312 = vmatmul.mubr.bf16.gmra.mrb[28].mxu1 %v1086_v42 }
 0x19a   :  { %1747 = vmatpush3.bf16.msra.mxu1 %v1964_v45 }
 0x19b   :  { %1748 = vmatprep.subr.bf16.mxu1 %v1965_v46 }
 0x19e   :  { %1749 = vmatpush3.bf16.msra.mxu1 %v1965_v46 }
 0x233   :  { %v1670_v47 = vpop.f32.mrb[0].mxu1 }
 0x234   :  { %v1671_v49 = vpop.f32.mrb[1].mxu1 }
 0x235   :  { %v1672_v50 = vadd.f32 %v1671_v49, %v1670_v47  ;;  %v1673_v51 = vpop.f32.mrb[2].mxu1 }
 0x236   :  { %v1674_v52 = vpop.f32.mrb[3].mxu1 }
 0x237   :  { %v1258_v53 = vadd.f32 %v1672_v50, %v2408_v48  ;;  %v1675_v56 = vadd.f32 %v1674_v52, %v1673_v51 }
 0x239   :  { %v1261_v57 = vadd.f32 %v1675_v56, %v2408_v48  ;;  %v1320_v58 = vmax.f32 %v1258_v53, 0.0 }
 0x23b   :  { %v1321_v59 = vmax.f32 %v1261_v57, 0.0  ;;  %v1676_v60 = vpop.f32.mrb[4].mxu1 }
 0x23c   :  { %v1677_v61 = vpop.f32.mrb[5].mxu1 }
 0x23d   :  { %v1678_v62 = vadd.f32 %v1677_v61, %v1676_v60  ;;  %v1679_v63 = vpop.f32.mrb[6].mxu1  ;;  %v1336_v0 = vpack.c.bf16 %v1321_v59, %v1320_v58 }
 0x23e   :  { %v1680_v1 = vpop.f32.mrb[7].mxu1 }
 0x23f   :  { %v1266_v2 = vadd.f32 %v1678_v62, %v2408_v48  ;;  %v1681_v3 = vadd.f32 %v1680_v1, %v1679_v63  ;;  %1750 = vmatprep.mubr.bf16.mxu1 %v1336_v0 }
 0x241   :  { %v1269_v4 = vadd.f32 %v1681_v3, %v2408_v48  ;;  %v1322_v5 = vmax.f32 %v1266_v2, 0.0 }
 0x243   :  { %v1323_v6 = vmax.f32 %v1269_v4, 0.0  ;;  %v1682_v7 = vpop.f32.mrb[8].mxu1 }
 0x244   :  { %v1683_v8 = vpop.f32.mrb[9].mxu1 }
 0x245   :  { %v1337_v9 = vpack.c.bf16 %v1323_v6, %v1322_v5  ;;  %v1684_v10 = vadd.f32 %v1683_v8, %v1682_v7  ;;  %v1685_v11 = vpop.f32.mrb[10].mxu1 }
 0x246   :  { %v1686_v12 = vpop.f32.mrb[11].mxu1 }
 0x247   :  { %v1274_v13 = vadd.f32 %v1684_v10, %v2408_v48  ;;  %v1687_v14 = vadd.f32 %v1686_v12, %v1685_v11  ;;  %1751 = vmatmul.mubr.bf16.vlgmr.msra.gmra.mrb[32].mxu1 %v1337_v9  ;;  %v1645_v11 = vld [vmem:[%s2483_s6] ss:$0 sm:$0xff] }
 0x249   :  { %v1277_v15 = vadd.f32 %v1687_v14, %v2408_v48  ;;  %v1324_v16 = vmax.f32 %v1274_v13, 0.0 }
 0x24b   :  { %v1325_v17 = vmax.f32 %v1277_v15, 0.0  ;;  %v1688_v18 = vpop.f32.mrb[12].mxu1 }
 0x24c   :  { %v1689_v19 = vpop.f32.mrb[13].mxu1 }
 0x24d   :  { %v1690_v20 = vadd.f32 %v1689_v19, %v1688_v18  ;;  %v1691_v21 = vpop.f32.mrb[14].mxu1  ;;  %v1338_v22 = vpack.c.bf16 %v1325_v17, %v1324_v16 }
 0x24e   :  { %v1692_v23 = vpop.f32.mrb[15].mxu1 }
 0x24f   :  { %v1282_v24 = vadd.f32 %v1690_v20, %v2408_v48  ;;  %v1693_v25 = vadd.f32 %v1692_v23, %v1691_v21  ;;  %1754 = vmatprep.mubr.bf16.mxu1 %v1338_v22 }
 0x251   :  { %v1285_v26 = vadd.f32 %v1693_v25, %v2408_v48  ;;  %v1326_v27 = vmax.f32 %v1282_v24, 0.0 }
 0x253   :  { %v1327_v28 = vmax.f32 %v1285_v26, 0.0  ;;  %v1694_v29 = vpop.f32.mrb[16].mxu1 }
 0x254   :  { %v1695_v30 = vpop.f32.mrb[17].mxu1 }
 0x255   :  { %v1696_v31 = vadd.f32 %v1695_v30, %v1694_v29  ;;  %v1697_v32 = vpop.f32.mrb[18].mxu1  ;;  %v1339_v33 = vpack.c.bf16 %v1327_v28, %v1326_v27 }
 0x256   :  { %v1698_v34 = vpop.f32.mrb[19].mxu1 }
 0x257   :  { %v1290_v35 = vadd.f32 %v1696_v31, %v2408_v48  ;;  %v1699_v36 = vadd.f32 %v1698_v34, %v1697_v32  ;;  %1755 = vmatmul.mubr.bf16.gmra.mrb[36].mxu1 %v1339_v33 }
 0x259   :  { %v1293_v37 = vadd.f32 %v1699_v36, %v2408_v48  ;;  %v1328_v38 = vmax.f32 %v1290_v35, 0.0 }
 0x25b   :  { %v1329_v39 = vmax.f32 %v1293_v37, 0.0  ;;  %v1700_v40 = vpop.f32.mrb[20].mxu1 }
 0x25c   :  { %v1701_v41 = vpop.f32.mrb[21].mxu1 }
 0x25d   :  { %v1702_v42 = vadd.f32 %v1701_v41, %v1700_v40  ;;  %v1703_v43 = vpop.f32.mrb[22].mxu1  ;;  %v1340_v44 = vpack.c.bf16 %v1329_v39, %v1328_v38 }
 0x25e   :  { %v1704_v54 = vpop.f32.mrb[23].mxu1 }
 0x25f   :  { %v1298_v55 = vadd.f32 %v1702_v42, %v2408_v48  ;;  %v1705_v45 = vadd.f32 %v1704_v54, %v1703_v43  ;;  %1758 = vmatprep.mubr.bf16.mxu1 %v1340_v44 }
 0x261   :  { %v1301_v46 = vadd.f32 %v1705_v45, %v2408_v48  ;;  %v1330_v47 = vmax.f32 %v1298_v55, 0.0 }
 0x263   :  { %v1331_v49 = vmax.f32 %v1301_v46, 0.0  ;;  %v1706_v50 = vpop.f32.mrb[24].mxu1 }
 0x264   :  { %v1707_v51 = vpop.f32.mrb[25].mxu1 }
 0x265   :  { %v1708_v52 = vadd.f32 %v1707_v51, %v1706_v50  ;;  %v1709_v53 = vpop.f32.mrb[26].mxu1  ;;  %v1341_v56 = vpack.c.bf16 %v1331_v49, %v1330_v47 }
 0x266   :  { %v1710_v57 = vpop.f32.mrb[27].mxu1 }
 0x267   :  { %v1306_v58 = vadd.f32 %v1708_v52, %v2408_v48  ;;  %v1711_v59 = vadd.f32 %v1710_v57, %v1709_v53  ;;  %1759 = vmatmul.mubr.bf16.gmra.mrb[40].mxu1 %v1341_v56 }
 0x269   :  { %v1309_v60 = vadd.f32 %v1711_v59, %v2408_v48  ;;  %v1332_v61 = vmax.f32 %v1306_v58, 0.0 }
 0x26b   :  { %v1333_v62 = vmax.f32 %v1309_v60, 0.0  ;;  %v1712_v63 = vpop.f32.mrb[28].mxu1 }
 0x26c   :  { %v1713_v0 = vpop.f32.mrb[29].mxu1 }
 0x26d   :  { %v1714_v1 = vadd.f32 %v1713_v0, %v1712_v63  ;;  %v1715_v2 = vpop.f32.mrb[30].mxu1  ;;  %v1342_v3 = vpack.c.bf16 %v1333_v62, %v1332_v61 }
 0x26e   :  { %v1716_v4 = vpop.f32.mrb[31].mxu1 }
 0x26f   :  { %v1314_v5 = vadd.f32 %v1714_v1, %v2408_v48  ;;  %v1717_v6 = vadd.f32 %v1716_v4, %v1715_v2  ;;  %1762 = vmatprep.mubr.bf16.mxu1 %v1342_v3 }
 0x271   :  { %v1317_v7 = vadd.f32 %v1717_v6, %v2408_v48  ;;  %v1334_v8 = vmax.f32 %v1314_v5, 0.0 }
 0x273   :  { %v1335_v9 = vmax.f32 %v1317_v7, 0.0 }
 0x275   :  { %v1343_v10 = vpack.c.bf16 %v1335_v9, %v1334_v8 }
 0x277   :  { %1763 = vmatmul.mubr.bf16.gmra.mrb[44].mxu1 %v1343_v10 }
 0x31a   :  { %v1752_v12 = vpop.f32.mrb[32].mxu1 }
 0x31b   :  { %v1458_v13 = vadd.f32 %v1752_v12, %v1645_v11  ;;  %v1449_v14 = vpop.f32.mrb[33].mxu1 }
 0x31c   :  { %v1450_v15 = vadd.f32 %v1645_v11, %v1449_v14  ;;  %v1753_v16 = vpop.f32.mrb[34].mxu1 }
 0x31d   :  { %1514 = vst [vmem:[%s2484_s7 + $0x10] sm:$0xff] %v1458_v13  ;;  %v1461_v17 = vadd.f32 %v1753_v16, %v1645_v11  ;;  %v1452_v18 = vpop.f32.mrb[35].mxu1 }
 0x31e   :  { %1512 = vst [vmem:[%s2484_s7] sm:$0xff] %v1450_v15  ;;  %v1453_v48 = vadd.f32 %v1645_v11, %v1452_v18 }
 0x31f   :  { %1515 = vst [vmem:[%s2484_s7 + $0x18] sm:$0xff] %v1461_v17 }
 0x320   :  { %1513 = vst [vmem:[%s2484_s7 + $0x8] sm:$0xff] %v1453_v48 }
 0x32a   :  { %v1756_v19 = vpop.f32.mrb[36].mxu1 }
 0x32b   :  { %v1474_v20 = vadd.f32 %v1756_v19, %v1645_v11  ;;  %v1465_v21 = vpop.f32.mrb[37].mxu1 }
 0x32c   :  { %v1466_v22 = vadd.f32 %v1645_v11, %v1465_v21  ;;  %v1757_v23 = vpop.f32.mrb[38].mxu1 }
 0x32d   :  { %1518 = vst [vmem:[%s2484_s7 + $0x30] sm:$0xff] %v1474_v20  ;;  %v1477_v24 = vadd.f32 %v1757_v23, %v1645_v11  ;;  %v1468_v25 = vpop.f32.mrb[39].mxu1 }
 0x32e   :  { %1516 = vst [vmem:[%s2484_s7 + $0x20] sm:$0xff] %v1466_v22  ;;  %v1469_v26 = vadd.f32 %v1645_v11, %v1468_v25 }
 0x32f   :  { %1519 = vst [vmem:[%s2484_s7 + $0x38] sm:$0xff] %v1477_v24 }
 0x330   :  { %1517 = vst [vmem:[%s2484_s7 + $0x28] sm:$0xff] %v1469_v26 }
 0x33a   :  { %v1760_v27 = vpop.f32.mrb[40].mxu1 }
 0x33b   :  { %v1490_v28 = vadd.f32 %v1760_v27, %v1645_v11  ;;  %v1481_v29 = vpop.f32.mrb[41].mxu1 }
 0x33c   :  { %v1482_v30 = vadd.f32 %v1645_v11, %v1481_v29  ;;  %v1761_v31 = vpop.f32.mrb[42].mxu1 }
 0x33d   :  { %1522 = vst [vmem:[%s2484_s7 + $0x50] sm:$0xff] %v1490_v28  ;;  %v1493_v32 = vadd.f32 %v1761_v31, %v1645_v11  ;;  %v1484_v33 = vpop.f32.mrb[43].mxu1 }
 0x33e   :  { %1520 = vst [vmem:[%s2484_s7 + $0x40] sm:$0xff] %v1482_v30  ;;  %v1485_v34 = vadd.f32 %v1645_v11, %v1484_v33 }
 0x33f   :  { %1523 = vst [vmem:[%s2484_s7 + $0x58] sm:$0xff] %v1493_v32 }
 0x340   :  { %1521 = vst [vmem:[%s2484_s7 + $0x48] sm:$0xff] %v1485_v34 }
 0x34a   :  { %v1764_v35 = vpop.f32.mrb[44].mxu1 }
 0x34b   :  { %v1506_v36 = vadd.f32 %v1764_v35, %v1645_v11  ;;  %v1497_v37 = vpop.f32.mrb[45].mxu1 }
 0x34c   :  { %v1498_v38 = vadd.f32 %v1645_v11, %v1497_v37  ;;  %v1765_v39 = vpop.f32.mrb[46].mxu1 }
 0x34d   :  { %1526 = vst [vmem:[%s2484_s7 + $0x70] sm:$0xff] %v1506_v36  ;;  %v1509_v40 = vadd.f32 %v1765_v39, %v1645_v11  ;;  %v1500_v41 = vpop.f32.mrb[47].mxu1 }
 0x34e   :  { %1524 = vst [vmem:[%s2484_s7 + $0x60] sm:$0xff] %v1498_v38  ;;  %v1501_v42 = vadd.f32 %v1645_v11, %v1500_v41 }
 0x34f   :  { %1527 = vst [vmem:[%s2484_s7 + $0x78] sm:$0xff] %v1509_v40 }
 0x350   :  { %1525 = vst [vmem:[%s2484_s7 + $0x68] sm:$0xff] %v1501_v42 }

</bundles_post_ra>
